<compile_context>
chip_gen: v7x
topology: tpu7x:2x2x1
jax: 0.10.0
libtpu: 0.0.40
codegen_flags: <defaults>
</compile_context>

<pallas_src>
import functools
import math

import jax
import jax.numpy as jnp
from jax import lax
from jax.experimental import pallas as pl
from jax.experimental.pallas import tpu as pltpu

_EPS = 1e-12  # F.normalize default eps

# Conservative per-core budget for block buffers + temporaries: fits v7x's
# 64 MiB/TensorCore with headroom (v5e/v6e have 128 MiB).
_VMEM_BUDGET_BYTES = 48 * 1024 * 1024
_VMEM_LIMIT_CAP_BYTES = 56 * 1024 * 1024


def _arc_cosine_kernel(z_ref, w_ref, inv_zn_ref, o_ref):
    """One (tile_b, tile_c) output tile of the cosine-similarity logits."""
    w = w_ref[...]                                            # (tc, D), native dtype
    wf = w.astype(jnp.float32)
    w_ss = jnp.sum(wf * wf, axis=-1, keepdims=True)           # (tc, 1) f32
    # 1 / max(||w||, eps) == rsqrt(max(||w||^2, eps^2)); exact rsqrt (EUP slot).
    inv_w = lax.rsqrt(jnp.maximum(w_ss, _EPS * _EPS))
    # Normalize weight rows (natural lane-direction broadcast, no transpose) and
    # cast back to the MXU operand dtype (bf16 stays bf16).
    wn = (wf * inv_w).astype(w.dtype)                          # (tc, D)

    # Contract the last dim of BOTH operands -> MXU consumes (tc, D) directly
    # (transposed-RHS matmul), f32 accumulation.
    # TODO(synk): on v5e, confirm via pl.lower_as_mlir that no per-step XLU transpose
    # of the weight tile is emitted; if one appears, pre-transpose weight to (D, C).
    cos = lax.dot_general(
        z_ref[...], wn,
        dimension_numbers=(((1,), (1,)), ((), ())),
        preferred_element_type=jnp.float32,
    )                                                          # (tb, tc) f32

    # Row rescale by the hoisted 1/||z|| (computed once in the wrapper, not once
    # per class tile).
    o_ref[...] = (cos * inv_zn_ref[...]).astype(o_ref.dtype)


def _round_up(x, m):
    return (x + m - 1) // m * m


def _sublane_multiple(dtype):
    # Sublane packing multiple for the MXU operand dtype.
    return {4: 8, 2: 16, 1: 32}[jnp.dtype(dtype).itemsize]


def _tile_vmem_bytes(tb, tc, d, op_size, out_size):
    # Double-buffered input/output blocks + in-kernel f32 temporaries
    # (normalized weight tile + f32 matmul result).
    dbuf_in = 2 * (tb * d * op_size + tc * d * op_size + tb * 4)
    dbuf_out = 2 * tb * tc * out_size
    temps = tc * d * 4 + tb * tc * 4
    return dbuf_in + dbuf_out + temps


@functools.partial(
    jax.jit, static_argnames=("tile_b", "tile_c", "out_dtype", "mxu_dtype"))
def clf_arc_forward(z, weight, *, tile_b=1024, tile_c=256, out_dtype=None,
                    mxu_dtype=None):
    """Pallas implementation of clf_Arc.forward (cosine logits, no margin/scale)."""
    B, D = z.shape
    C, Dw = weight.shape
    assert D == Dw, "feature dims of z and weight must match"
    assert z.dtype == weight.dtype, "z and weight must share a dtype"

    op_dtype = jnp.dtype(mxu_dtype) if mxu_dtype is not None else jnp.dtype(z.dtype)
    out_dt = jnp.dtype(out_dtype) if out_dtype is not None else jnp.dtype(z.dtype)
    op_size = op_dtype.itemsize
    out_size = out_dt.itemsize
    sub = _sublane_multiple(op_dtype)

    # Lane-dense class tile (multiple of 128); batch tile as large as possible so the
    # weight matrix is streamed from HBM as few times as possible (ideally once).
    tc = min(_round_up(tile_c, 128), _round_up(C, 128))
    tb = min(_round_up(tile_b, sub), _round_up(B, sub))

    def _fits(tb_, tc_):
        return _tile_vmem_bytes(tb_, tc_, D, op_size, out_size) <= _VMEM_BUDGET_BYTES

    # Shrink tiles until double-buffered blocks fit the per-core VMEM budget.
    while not _fits(tb, tc) and tb > sub:
        tb = max(sub, (tb // 2) // sub * sub)
    while not _fits(tb, tc) and tc > 128:
        tc = max(128, (tc // 2) // 128 * 128)

    B_pad = _round_up(B, tb)
    C_pad = _round_up(C, tc)

    z_p = z if B_pad == B else jnp.pad(z, ((0, B_pad - B), (0, 0)))
    w_p = weight if C_pad == C else jnp.pad(weight, ((0, C_pad - C), (0, 0)))

    # Hoisted: 1/||z|| per batch row, computed once (one cheap pass over the small z
    # array; padded zero rows give a clamped 1/eps that multiplies an exact 0 cosine).
    z32 = z_p.astype(jnp.float32)
    inv_zn = lax.rsqrt(
        jnp.maximum(jnp.sum(z32 * z32, axis=-1, keepdims=True), _EPS * _EPS))  # (B_pad, 1)

    if mxu_dtype is not None:
        z_p = z_p.astype(op_dtype)
        w_p = w_p.astype(op_dtype)

    grid = (B_pad // tb, C_pad // tc)
    vmem_limit = int(min(
        max(1.25 * _tile_vmem_bytes(tb, tc, D, op_size, out_size) + (4 << 20), 16 << 20),
        _VMEM_LIMIT_CAP_BYTES))

    out = pl.pallas_call(
        _arc_cosine_kernel,
        out_shape=jax.ShapeDtypeStruct((B_pad, C_pad), out_dt),
        grid_spec=pltpu.PrefetchScalarGridSpec(
            num_scalar_prefetch=0,
            grid=grid,
            in_specs=[
                pl.BlockSpec((tb, D), lambda i, j: (i, 0)),   # z batch tile
                pl.BlockSpec((tc, D), lambda i, j: (j, 0)),   # weight class tile
                pl.BlockSpec((tb, 1), lambda i, j: (i, 0)),   # hoisted 1/||z||
            ],
            out_specs=pl.BlockSpec((tb, tc), lambda i, j: (i, j)),
        ),
        compiler_params=pltpu.CompilerParams(
            dimension_semantics=("parallel", "parallel"),
            vmem_limit_bytes=vmem_limit,
        ),
    )(z_p, w_p, inv_zn)

    return out[:B, :C]


def xavier_uniform(key, shape, dtype=jnp.float32):
    # nn.init.xavier_uniform_ for a (out_dim, in_dim) weight.
    fan_out, fan_in = shape
    bound = math.sqrt(6.0 / (fan_in + fan_out))
    return jax.random.uniform(key, shape, dtype=dtype, minval=-bound, maxval=bound)


def reference_forward(z, weight, eps=_EPS):
    zn = z / jnp.maximum(jnp.linalg.norm(z, axis=-1, keepdims=True), eps)
    wn = weight / jnp.maximum(jnp.linalg.norm(weight, axis=-1, keepdims=True), eps)
    return zn @ wn.T


if __name__ == "__main__":
    # Small shapes consistent with the module: z is (batch, args.out_dim),
    # weight is (num_classes, args.out_dim).
    B, D, C = 8, 32, 16

    key = jax.random.PRNGKey(0)
    k_z, k_w = jax.random.split(key)
    z = jax.random.normal(k_z, (B, D), dtype=jnp.float32)
    weight = xavier_uniform(k_w, (C, D))

    cosine = clf_arc_forward(z, weight)
    cosine = jax.block_until_ready(cosine)

    ref = reference_forward(z, weight)
    assert cosine.shape == (B, C)
    assert cosine.dtype == z.dtype
    assert jnp.allclose(cosine, ref, atol=1e-4, rtol=1e-4), "mismatch vs reference"

    print("KERNEL_OK")
</pallas_src>

<mosaic_0001>
module attributes {stable_mosaic.version = 11 : i64} {
  func.func @_arc_cosine_kernel(%arg0: i32, %arg1: i32, %arg2: memref<8x32xf32, #tpu.memory_space<vmem>>, %arg3: memref<128x32xf32, #tpu.memory_space<vmem>>, %arg4: memref<8x1xf32, #tpu.memory_space<vmem>>, %arg5: memref<8x128xf32, #tpu.memory_space<vmem>>) attributes {dimension_semantics = [#tpu.dimension_semantics<parallel>, #tpu.dimension_semantics<parallel>], iteration_bounds = array<i64: 1, 1>, scalar_prefetch = 0 : i64, scratch_operands = 0 : i64, tpu.core_type = #tpu.core_type<tc>, window_params = [{transform_indices = @transform_0, window_bounds = array<i64: 8, 32>}, {transform_indices = @transform_1, window_bounds = array<i64: 128, 32>}, {transform_indices = @transform_2, window_bounds = array<i64: 8, 1>}, {transform_indices = @transform_3, window_bounds = array<i64: 8, 128>}]} {
    %c0 = arith.constant 0 : index
    %c0_0 = arith.constant 0 : index
    %0 = vector.load %arg3[%c0, %c0_0] : memref<128x32xf32, #tpu.memory_space<vmem>>, vector<128x32xf32>
    %1 = arith.mulf %0, %0 : vector<128x32xf32>
    %cst = arith.constant dense<0.000000e+00> : vector<128xf32>
    %2 = vector.multi_reduction <add>, %1, %cst [1] : vector<128x32xf32> to vector<128xf32>
    %3 = vector.shape_cast %2 : vector<128xf32> to vector<128x1xf32>
    %cst_1 = arith.constant 1.000000e-24 : f32
    %4 = vector.broadcast %cst_1 : f32 to vector<128x1xf32>
    %5 = arith.maximumf %3, %4 : vector<128x1xf32>
    %6 = math.rsqrt %5 : vector<128x1xf32>
    %7 = vector.broadcast %6 : vector<128x1xf32> to vector<128x32xf32>
    %8 = arith.mulf %0, %7 : vector<128x32xf32>
    %c0_2 = arith.constant 0 : index
    %c0_3 = arith.constant 0 : index
    %9 = vector.load %arg2[%c0_2, %c0_3] : memref<8x32xf32, #tpu.memory_space<vmem>>, vector<8x32xf32>
    %cst_4 = arith.constant dense<0.000000e+00> : vector<8x128xf32>
    %10 = tpu.matmul %9, %8, %cst_4 {dimension_numbers = #tpu.dot_dimension_numbers<[1], [1], [0], [0], [0, 0, 1, 0], [], []>} : vector<8x32xf32>, vector<128x32xf32>, vector<8x128xf32> -> vector<8x128xf32>
    %c0_5 = arith.constant 0 : index
    %c0_6 = arith.constant 0 : index
    %11 = vector.load %arg4[%c0_5, %c0_6] : memref<8x1xf32, #tpu.memory_space<vmem>>, vector<8x1xf32>
    %12 = vector.broadcast %11 : vector<8x1xf32> to vector<8x128xf32>
    %13 = arith.mulf %10, %12 : vector<8x128xf32>
    %c0_7 = arith.constant 0 : index
    %c0_8 = arith.constant 0 : index
    %14 = vector.load %arg5[%c0_7, %c0_8] : memref<8x128xf32, #tpu.memory_space<vmem>>, vector<8x128xf32>
    tpu.vector_store %arg5[%c0_7, %c0_8], %13 {strides = array<i32>} : memref<8x128xf32, #tpu.memory_space<vmem>>, vector<8x128xf32>,
    return
  }
  func.func @transform_0(%arg0: i32, %arg1: i32) -> (i32, i32) {
    %c0_i32 = arith.constant 0 : i32
    %c0_i32_0 = arith.constant 0 : i32
    return %arg0, %c0_i32 : i32, i32
  }
  func.func @transform_1(%arg0: i32, %arg1: i32) -> (i32, i32) {
    %c0_i32 = arith.constant 0 : i32
    %c0_i32_0 = arith.constant 0 : i32
    return %arg1, %c0_i32 : i32, i32
  }
  func.func @transform_2(%arg0: i32, %arg1: i32) -> (i32, i32) {
    %c0_i32 = arith.constant 0 : i32
    %c0_i32_0 = arith.constant 0 : i32
    return %arg0, %c0_i32 : i32, i32
  }
  func.func @transform_3(%arg0: i32, %arg1: i32) -> (i32, i32) {
    %c0_i32 = arith.constant 0 : i32
    return %arg0, %arg1 : i32, i32
  }
}

</mosaic_0001>

<bundles_post_ra>
// kernel: clf_arc_forward.1
= control target key start
LH: loop header
LB: loop body
LE: loop exit
PB: predicated region body
PF: predicated region fallthrough
CT: control target
= control target key end

     0   :  { %vm47_vm0 = vcmask 261120   ;;  %s669_s0 = inlined_call_operand.vmem [shape: f32[8,32], index: 0, kind: input, shape index: {}]   ;;  %s670_s1 = inlined_call_operand.vmem [shape: f32[128,32], index: 1, kind: input, shape index: {}]   ;;  %s671_s2 = inlined_call_operand.vmem [shape: f32[8,1], index: 2, kind: input, shape index: {}]   ;;  %s672_s3 = inlined_call_operand.hbm [shape: f32[8,128], index: 3, kind: output, shape index: {}]  }
   0x1   :  { %v479_v0 = vld [vmem:[%s670_s1] sm:$0xff]  ;;  %v484_v1 = vld [vmem:[%s670_s1 + $0x10] sm:$0xff]  ;;  %v489_v2 = vld [vmem:[%s670_s1 + $0x8] sm:$0xff] }
   0x2   :  { %v31_v3 = vmul.f32 %v479_v0, %v479_v0  ;;  %v33_v4 = vmul.f32 %v484_v1, %v484_v1  ;;  %v32_v5 = vmul.f32 %v489_v2, %v489_v2  ;;  %v500_v6 = vld [vmem:[%s670_s1 + $0x18] sm:$0xff]  ;;  %v507_v8 = vld [vmem:[%s670_s1 + $0x28] sm:$0xff]  ;;  %v512_v9 = vld [vmem:[%s670_s1 + $0x20] sm:$0xff] }
   0x3   :  { %v34_v7 = vmul.f32 %v500_v6, %v500_v6  ;;  %v36_v14 = vmul.f32 %v507_v8, %v507_v8  ;;  %v35_v15 = vmul.f32 %v512_v9, %v512_v9 }
   0x4   :  { %v48_v10 = vsel %vm47_vm0, %v31_v3, 0.0  ;;  %v54_v11 = vsel %vm47_vm0, %v33_v4, 0.0  ;;  %v51_v12 = vsel %vm47_vm0, %v32_v5, 0.0 }
   0x5   :  { %49 = vadd.xlane.f32.xlu0 %v48_v10  ;;  %55 = vadd.xlane.f32.xlu1 %v54_v11  ;;  %v57_v13 = vsel %vm47_vm0, %v34_v7, 0.0 }
   0x6   :  { %8 = vsyncpa [#allocation3], 0  ;;  %v525_v16 = vld [vmem:[%s670_s1 + $0x38] sm:$0xff]  ;;  %v530_v17 = vld [vmem:[%s670_s1 + $0x30] sm:$0xff]  ;;  %v63_v18 = vsel %vm47_vm0, %v36_v14, 0.0  ;;  %v60_v19 = vsel %vm47_vm0, %v35_v15, 0.0 }
   0x7   :  { %v38_v20 = vmul.f32 %v525_v16, %v525_v16  ;;  %v37_v21 = vmul.f32 %v530_v17, %v530_v17  ;;  %v541_v22 = vld [vmem:[%s670_s1 + $0x48] sm:$0xff]  ;;  %v546_v23 = vld [vmem:[%s670_s1 + $0x40] sm:$0xff]  ;;  %v557_v28 = vld [vmem:[%s670_s1 + $0x58] sm:$0xff]  ;;  %v451_v48 = vmov 0.0|0.0   ;;  %vm452_vm1 = vmmov 0   ;;  %s455_s19 = smov [#allocation2]  }
   0x8   :  { %v40_v26 = vmul.f32 %v541_v22, %v541_v22  ;;  %v39_v27 = vmul.f32 %v546_v23, %v546_v23  ;;  %v562_v29 = vld [vmem:[%s670_s1 + $0x50] sm:$0xff]  ;;  %v42_v32 = vmul.f32 %v557_v28, %v557_v28  ;;  %v573_v34 = vld [vmem:[%s670_s1 + $0x68] sm:$0xff]  ;;  %v578_v35 = vld [vmem:[%s670_s1 + $0x60] sm:$0xff]  ;;  %357 = vmatprep.subr.bf16.mxu0 %v451_v48  ;;  %v453_v49 = vmov 0.0   ;;  %s280_s20 = sshll.u32 %s455_s19, 4  ;;  %s281_s20 = int_to_ptr.vmem [resolvable:$true] %s280_s20 }
   0x9   :  { %52 = vadd.xlane.f32.xlu0 %v51_v12  ;;  %58 = vadd.xlane.f32.xlu1 %v57_v13  ;;  %v69_v24 = vsel %vm47_vm0, %v38_v20, 0.0  ;;  %v66_v25 = vsel %vm47_vm0, %v37_v21, 0.0  ;;  %v41_v33 = vmul.f32 %v562_v29, %v562_v29  ;;  %v44_v38 = vmul.f32 %v573_v34, %v573_v34  ;;  %v589_v40 = vld [vmem:[%s670_s1 + $0x78] sm:$0xff]  ;;  %v594_v41 = vld [vmem:[%s670_s1 + $0x70] sm:$0xff]  ;;  %v266_v50 = vld [vmem:[%s671_s2] sm:$0xff]  ;;  %s427_s21 = scalar_lea.vmem %s281_s20, 128  ;;  %p432_p1 = scmp.lt.s32.totalorder %s281_s20, %s281_s20 }
   0xa   :  { %v75_v30 = vsel %vm47_vm0, %v40_v26, 0.0  ;;  %v72_v31 = vsel %vm47_vm0, %v39_v27, 0.0  ;;  %v81_v36 = vsel %vm47_vm0, %v42_v32, 0.0  ;;  %v43_v39 = vmul.f32 %v578_v35, %v578_v35  ;;  %354 = vmatprep.mubr.msk.f32.mxu0 %vm452_vm1, %v453_v49  ;;  %vm612_vm2 = vmpackc.low %vm47_vm0, %vm47_vm0  ;;  %p428_p0 = scmp.ne.s32.totalorder %s281_s20, %s427_s21  ;;  %p433_p2 = scmp.lt.s32.totalorder %s427_s21, %s427_s21 }
   0xb   :  { %v78_v37 = vsel %vm47_vm0, %v41_v33, 0.0  ;;  %v87_v42 = vsel %vm47_vm0, %v44_v38, 0.0  ;;  %v46_v44 = vmul.f32 %v589_v40, %v589_v40  ;;  %v45_v45 = vmul.f32 %v594_v41, %v594_v41 }
   0xc   :  { %v84_v43 = vsel %vm47_vm0, %v43_v39, 0.0  ;;  %v454_v51 = vmov 0   ;;  %p434_p3 = por %p433_p2, %p432_p1 }
   0xd   :  { %64 = vadd.xlane.f32.xlu1 %v63_v18  ;;  %61 = vadd.xlane.f32.xlu0 %v60_v19  ;;  %v93_v46 = vsel %vm47_vm0, %v46_v44, 0.0  ;;  %v90_v47 = vsel %vm47_vm0, %v45_v45, 0.0 }
   0xe   :  { %394 = vset.pattern.permute.xlu0 %v454_v51  ;;  %p435_p4 = pnand %p434_p3, %p428_p0 }
  0x11   :  { %70 = vadd.xlane.f32.xlu1 %v69_v24  ;;  %67 = vadd.xlane.f32.xlu0 %v66_v25 }
  0x15   :  { %76 = vadd.xlane.f32.xlu1 %v75_v30  ;;  %73 = vadd.xlane.f32.xlu0 %v72_v31 }
  0x19   :  { %82 = vadd.xlane.f32.xlu1 %v81_v36  ;;  %79 = vadd.xlane.f32.xlu0 %v78_v37 }
  0x1d   :  { %88 = vadd.xlane.f32.xlu1 %v87_v42  ;;  %85 = vadd.xlane.f32.xlu0 %v84_v43 }
  0x21   :  { %94 = vadd.xlane.f32.xlu1 %v93_v46  ;;  %91 = vadd.xlane.f32.xlu0 %v90_v47 }
  0x37   :  { %269 = vperm.xlu0 %394, %v266_v50  }
  0x92   :  { %v50_v52 = vpop.xlane.xlu0 %49  ;;  %v56_v53 = vpop.xlane.xlu1 %55 }
  0x93   :  { %v96_v54 = vmax.f32 %v50_v52, 1e-24  ;;  %v98_v58 = vmax.f32 %v56_v53, 1e-24 }
  0x95   :  { %395 = vrsqrt.f32 %v96_v54 }
  0x96   :  { %v53_v55 = vpop.xlane.xlu0 %52  ;;  %v59_v56 = vpop.xlane.xlu1 %58 }
  0x97   :  { %v97_v57 = vmax.f32 %v53_v55, 1e-24  ;;  %v99_v59 = vmax.f32 %v59_v56, 1e-24 }
  0x99   :  { %397 = vrsqrt.f32 %v97_v57 }
  0x9a   :  { %v65_v60 = vpop.xlane.xlu1 %64  ;;  %399 = vrsqrt.f32 %v98_v58  ;;  %v62_v61 = vpop.xlane.xlu0 %61 }
  0x9b   :  { %401 = vrsqrt.f32 %v99_v59  ;;  %v101_v62 = vmax.f32 %v65_v60, 1e-24  ;;  %v100_v63 = vmax.f32 %v62_v61, 1e-24 }
  0x9d   :  { %403 = vrsqrt.f32 %v101_v62 }
  0x9e   :  { %405 = vrsqrt.f32 %v100_v63  ;;  %v71_v5 = vpop.xlane.xlu1 %70  ;;  %v68_v11 = vpop.xlane.xlu0 %67 }
  0x9f   :  { %v396_v3 = vpop.eup %395  ;;  %v103_v15 = vmax.f32 %v71_v5, 1e-24  ;;  %v102_v19 = vmax.f32 %v68_v11, 1e-24 }
  0xa0   :  { %v128_v7 = vmul.f32 %v396_v3, %v479_v0 }
  0xa1   :  { %407 = vrsqrt.f32 %v103_v15 }
  0xa2   :  { %409 = vrsqrt.f32 %v102_v19  ;;  %v77_v20 = vpop.xlane.xlu1 %76  ;;  %v74_v24 = vpop.xlane.xlu0 %73 }
  0xa3   :  { %v398_v4 = vpop.eup %397  ;;  %v105_v27 = vmax.f32 %v77_v20, 1e-24  ;;  %v104_v30 = vmax.f32 %v74_v24, 1e-24 }
  0xa4   :  { %v129_v10 = vmul.f32 %v398_v4, %v489_v2  ;;  %v400_v13 = vpop.eup %399 }
  0xa5   :  { %v402_v18 = vpop.eup %401  ;;  %v130_v0 = vmul.f32 %v400_v13, %v484_v1  ;;  %411 = vrsqrt.f32 %v105_v27 }
  0xa6   :  { %v358_v14 = vpack.c.bf16 %v129_v10, %v128_v7  ;;  %v131_v2 = vmul.f32 %v402_v18, %v500_v6  ;;  %413 = vrsqrt.f32 %v104_v30  ;;  %v83_v1 = vpop.xlane.xlu1 %82  ;;  %v80_v36 = vpop.xlane.xlu0 %79 }
  0xa7   :  { %v404_v21 = vpop.eup %403  ;;  %v107_v38 = vmax.f32 %v83_v1, 1e-24  ;;  %v106_v39 = vmax.f32 %v80_v36, 1e-24 }
  0xa8   :  { %360 = vmatpush3.bf16.xpose.msk.msra.mxu0 %vm612_vm2, %v358_v14  ;;  %v406_v25 = vpop.eup %405  ;;  %v362_v26 = vpack.c.bf16 %v131_v2, %v130_v0  ;;  %v133_v32 = vmul.f32 %v404_v21, %v507_v8 }
  0xa9   :  { %361 = vmatprep.subr.bf16.mxu0 %v451_v48  ;;  %v132_v31 = vmul.f32 %v406_v25, %v512_v9  ;;  %415 = vrsqrt.f32 %v107_v38 }
  0xaa   :  { %417 = vrsqrt.f32 %v106_v39  ;;  %v89_v8 = vpop.xlane.xlu1 %88  ;;  %v86_v45 = vpop.xlane.xlu0 %85 }
  0xab   :  { %v408_v6 = vpop.eup %407  ;;  %v366_v33 = vpack.c.bf16 %v133_v32, %v132_v31  ;;  %v109_v47 = vmax.f32 %v89_v8, 1e-24  ;;  %v108_v49 = vmax.f32 %v86_v45, 1e-24 }
  0xac   :  { %v410_v37 = vpop.eup %409  ;;  %v135_v9 = vmul.f32 %v408_v6, %v525_v16 }
  0xad   :  { %v134_v42 = vmul.f32 %v410_v37, %v530_v17  ;;  %419 = vrsqrt.f32 %v109_v47 }
  0xae   :  { %421 = vrsqrt.f32 %v108_v49  ;;  %v95_v16 = vpop.xlane.xlu1 %94  ;;  %v92_v53 = vpop.xlane.xlu0 %91 }
  0xaf   :  { %v412_v43 = vpop.eup %411  ;;  %v370_v44 = vpack.c.bf16 %v135_v9, %v134_v42  ;;  %v111_v55 = vmax.f32 %v95_v16, 1e-24  ;;  %v110_v56 = vmax.f32 %v92_v53, 1e-24 }
  0xb0   :  { %364 = vmatpush3.bf16.xpose.msk.msra.mxu0 %vm612_vm2, %v362_v26  ;;  %v414_v46 = vpop.eup %413  ;;  %v137_v17 = vmul.f32 %v412_v43, %v541_v22 }
  0xb1   :  { %365 = vmatprep.subr.bf16.mxu0 %v451_v48  ;;  %v136_v50 = vmul.f32 %v414_v46, %v546_v23  ;;  %423 = vrsqrt.f32 %v111_v55 }
  0xb2   :  { %425 = vrsqrt.f32 %v110_v56 }
  0xb3   :  { %v416_v51 = vpop.eup %415  ;;  %v374_v52 = vpack.c.bf16 %v137_v17, %v136_v50 }
  0xb4   :  { %v418_v54 = vpop.eup %417  ;;  %v139_v23 = vmul.f32 %v416_v51, %v557_v28 }
  0xb5   :  { %v138_v57 = vmul.f32 %v418_v54, %v562_v29 }
  0xb7   :  { %v420_v22 = vpop.eup %419  ;;  %v378_v58 = vpack.c.bf16 %v139_v23, %v138_v57 }
  0xb8   :  { %368 = vmatpush3.bf16.xpose.msk.msra.mxu0 %vm612_vm2, %v366_v33  ;;  %v422_v59 = vpop.eup %421  ;;  %v141_v61 = vmul.f32 %v420_v22, %v573_v34  ;;  %v144_v34 = vld [vmem:[%s669_s0] sm:$0xff] }
  0xb9   :  { %369 = vmatprep.subr.bf16.mxu0 %v451_v48  ;;  %v140_v60 = vmul.f32 %v422_v59, %v578_v35  ;;  %v270_v35 = vpop.permute.xlu0 %269 }
  0xbb   :  { %v424_v62 = vpop.eup %423  ;;  %v382_v29 = vpack.c.bf16 %v141_v61, %v140_v60 }
  0xbc   :  { %v426_v63 = vpop.eup %425  ;;  %v143_v3 = vmul.f32 %v424_v62, %v589_v40 }
  0xbd   :  { %v142_v28 = vmul.f32 %v426_v63, %v594_v41 }
  0xbf   :  { %v386_v4 = vpack.c.bf16 %v143_v3, %v142_v28 }
  0xc0   :  { %372 = vmatpush3.bf16.xpose.msk.msra.mxu0 %vm612_vm2, %v370_v44 }
  0xc1   :  { %373 = vmatprep.subr.bf16.mxu0 %v451_v48 }
  0xc8   :  { %376 = vmatpush3.bf16.xpose.msk.msra.mxu0 %vm612_vm2, %v374_v52 }
  0xc9   :  { %377 = vmatprep.subr.bf16.mxu0 %v451_v48 }
  0xd0   :  { %380 = vmatpush3.bf16.xpose.msk.msra.mxu0 %vm612_vm2, %v378_v58 }
  0xd1   :  { %381 = vmatprep.subr.bf16.mxu0 %v451_v48 }
  0xd8   :  { %384 = vmatpush3.bf16.xpose.msk.msra.mxu0 %vm612_vm2, %v382_v29 }
  0xd9   :  { %385 = vmatprep.subr.bf16.mxu0 %v451_v48 }
  0xe0   :  { %388 = vmatpush3.bf16.xpose.msk.msra.mxu0 %vm612_vm2, %v386_v4 }
  0xe7   :  { %355 = vmatmul.mubr.msk.f32.vlgmr.msra.gmra.mrb[0].mxu0 %vm47_vm0, %v144_v34 }
 0x1ba   :  { %v262_v5 = vpop.f32.mrb[0].mxu0 }
 0x1bb   :  { %v272_v7 = vmul.f32 %v270_v35, %v262_v5  ;;  %v356_v41 = vpop.f32.mrb[1].mxu0 }
 0x1bd   :  { %273 = vst [vmem:[#allocation2] sm:$0xff] %v272_v7 }
 0x1be   :  { %438 = shalt.err (!%p435_p4)
}
 0x1bf   :  { %s439_s0 = scalar_lea.hbm %s672_s3, 128 }
 0x1c0   :  { %p440_p5 = scmp.ne.s32.totalorder %s672_s3, %s439_s0  ;;  %p443_p6 = scmp.lt.u32.totalorder %s439_s0, %s672_s3 }
 0x1c2   :  { %p445_p7 = pnand %p443_p6, %p440_p5 }
 0x1c4   :  { %448 = shalt.err (!%p445_p7)
}
 0x1c5   :  { %283 = dma.vmem_to_hbm [thread:$0]  %s281_s20, 128, %s672_s3, [#allocation3]  }
 0x1c6   :  { %449 = dma.done.wait [#allocation3], 128  }
 0x1c7   :  { %450 = vsyncadd [#allocation3], 4294967168 }
 0x1c8   :  { %287 = vsyncpa [#allocation3], 1 }

</bundles_post_ra>
